<compile_context>
chip_gen: v7x
topology: tpu7x:2x2x1
jax: 0.10.0
libtpu: 0.0.40
codegen_flags: <defaults>
</compile_context>

<pallas_src>
import numpy as np
import jax
import jax.numpy as jnp
from jax import lax
from jax.experimental import pallas as pl
from jax.experimental.pallas import tpu as pltpu


def _round_up(v, m):
    return -(-v // m) * m


def _make_kernel(apply_relu, tile_n, tile_e):
    def kernel(rel_ref, ntile_ref, first_ref, last_ref,   # SMEM scalar-prefetch tables
               xsrc_ref,    # (TILE_E, in_p)      bf16, norm pre-folded into rows
               dst_ref,     # (1, 1, TILE_E)      int32, dst local to node tile (-1 = pad)
               w_ref,       # (1, in_p, TILE_OUT) bf16 composed W_r column slab
               bias_ref,    # (1, TILE_OUT)       f32
               out_ref):    # (TILE_N, TILE_OUT)  f32 accumulator for current node tile
        del rel_ref, ntile_ref
        t = pl.program_id(1)

        # First edge tile targeting this (node-tile, out-col) block: zero the accumulator.
        @pl.when(first_ref[t] == 1)
        def _init():
            out_ref[...] = jnp.zeros_like(out_ref)

        # msg = (norm * x[src]) @ W_r : (TILE_E, in_p) @ (in_p, TILE_OUT) on the MXU.
        msg = jnp.dot(xsrc_ref[...], w_ref[0], preferred_element_type=jnp.float32)

        # Scatter-add into the node tile via a one-hot matmul (exact 0/1 even in bf16).
        node_ids = lax.broadcasted_iota(jnp.int32, (tile_n, tile_e), 0)
        onehot = jnp.where(node_ids == dst_ref[0], 1.0, 0.0).astype(jnp.bfloat16)
        out_ref[...] += jnp.dot(onehot, msg.astype(jnp.bfloat16),
                                preferred_element_type=jnp.float32)

        # Last edge tile of this node tile: fused bias + relu epilogue (dropout p=0).
        @pl.when(last_ref[t] == 1)
        def _epilogue():
            res = out_ref[...] + bias_ref[...]
            if apply_relu:
                res = jnp.maximum(res, 0.0)
            out_ref[...] = res

    return kernel


def seastar_rgcn_layer1(x, weight, w_comp, h_bias, src, dst, etypes, norm, *,
                        apply_relu=True, tile_e=None, tile_n=None):
    """Pallas implementation of Seastar_EglRGCNLayer.forward (coo, layer_type=1)."""
    n_nodes, in_feat = x.shape
    num_bases, _, out_feat = weight.shape

    # ---- basis composition W[r] = sum_b w_comp[r,b] * weight[b] (small matmul via XLA) ----
    if w_comp is not None and num_bases < w_comp.shape[0]:
        num_rels = w_comp.shape[0]
        w = jnp.matmul(w_comp.astype(jnp.float32),
                       weight.reshape(num_bases, in_feat * out_feat).astype(jnp.float32))
        w = w.reshape(num_rels, in_feat, out_feat)
    else:  # module uses weight directly when num_bases >= num_rels
        w = weight.astype(jnp.float32)
        num_rels = num_bases

    # ---- generation-aware tile sizes & VMEM budget ----
    try:
        vmem_cap = int(pltpu.get_tpu_info().vmem_capacity_bytes)
    except Exception:
        vmem_cap = 64 * 1024 * 1024
    try:
        kind = jax.devices()[0].device_kind.lower()
    except Exception:
        kind = ""
    is_v5e = ("v5 lite" in kind) or ("v5e" in kind) or ("v5litepod" in kind)
    if tile_e is None:
        tile_e = 128 if is_v5e else 256          # v5e MXU 4x128^2; v6e/v7x 2x256^2
    vmem_limit = min(vmem_cap * 3 // 4, 100 * 1024 * 1024)

    # ---- lane/sublane-aligned padding ----
    in_p = _round_up(in_feat, 128)
    out_p = _round_up(out_feat, 128)
    tile_out = 256 if (out_p % 256 == 0 and not is_v5e) else 128
    num_out_tiles = out_p // tile_out
    if tile_n is None:
        tile_n = min(256, _round_up(n_nodes, 8))
    tile_n = max(8, _round_up(tile_n, 8))
    n_pad = _round_up(max(n_nodes, 1), tile_n)
    num_ntiles = n_pad // tile_n

    # ---- host-side edge preprocessing: bucket by (dst node-tile, relation), pad to TILE_E ----
    src_np = np.asarray(src, dtype=np.int32).reshape(-1)
    dst_np = np.asarray(dst, dtype=np.int32).reshape(-1)
    et_np = np.asarray(etypes, dtype=np.int32).reshape(-1)
    norm_np = np.asarray(norm, dtype=np.float32).reshape(-1)

    srcs, dst_loc, norms = [], [], []
    rel_ids, ntile_ids, first_fl, last_fl = [], [], [], []
    for nt in range(num_ntiles):
        base = nt * tile_n
        in_nt = (dst_np >= base) & (dst_np < base + tile_n)
        tiles_here = 0
        for r in range(num_rels):
            sel = np.nonzero(in_nt & (et_np == r))[0]
            if sel.size == 0:
                continue
            nt_r = _round_up(sel.size, tile_e) // tile_e
            pad = nt_r * tile_e - sel.size
            srcs.append(np.concatenate([src_np[sel], np.zeros(pad, np.int32)]))
            # dst local to this node tile; padded edges get -1 (match no row)
            dst_loc.append(np.concatenate([dst_np[sel] - base,
                                           np.full(pad, -1, np.int32)]))
            norms.append(np.concatenate([norm_np[sel], np.zeros(pad, np.float32)]))
            rel_ids.extend([r] * nt_r)
            tiles_here += nt_r
        if tiles_here == 0:
            # dummy all-zero tile so this node tile still gets initialized + bias/relu
            srcs.append(np.zeros(tile_e, np.int32))
            dst_loc.append(np.full(tile_e, -1, np.int32))
            norms.append(np.zeros(tile_e, np.float32))
            rel_ids.append(0)
            tiles_here = 1
        ntile_ids.extend([nt] * tiles_here)
        first_fl.extend([1] + [0] * (tiles_here - 1))
        last_fl.extend([0] * (tiles_here - 1) + [1])

    num_tiles = len(rel_ids)
    src_all = np.concatenate(srcs)
    dst_all = np.concatenate(dst_loc).reshape(num_tiles, 1, tile_e)
    norm_all = np.concatenate(norms).astype(np.float32)

    # ---- padded / bf16 operands (gather + norm fold done by XLA outside the kernel) ----
    x_pad = jnp.zeros((n_nodes, in_p), jnp.float32).at[:, :in_feat].set(
        x.astype(jnp.float32))
    x_src = (x_pad[jnp.asarray(src_all)] *
             jnp.asarray(norm_all)[:, None]).astype(jnp.bfloat16)      # (E_pad, in_p)
    w_pad = jnp.zeros((num_rels, in_p, out_p), jnp.float32).at[
        :, :in_feat, :out_feat].set(w).astype(jnp.bfloat16)
    bias_pad = jnp.zeros((1, out_p), jnp.float32).at[0, :out_feat].set(
        h_bias.astype(jnp.float32))

    kernel = _make_kernel(apply_relu, tile_n, tile_e)

    grid_spec = pltpu.PrefetchScalarGridSpec(
        num_scalar_prefetch=4,
        grid=(num_out_tiles, num_tiles),
        in_specs=[
            # gathered+scaled source features: one (TILE_E, in_p) block per edge tile
            pl.BlockSpec((tile_e, in_p),
                         lambda j, t, rel, ntl, fst, lst: (t, 0)),
            # per-tile local dst ids, streamed one row per step
            pl.BlockSpec((1, 1, tile_e),
                         lambda j, t, rel, ntl, fst, lst: (t, 0, 0)),
            # composed per-relation weight column slab, selected by prefetched relation id
            pl.BlockSpec((1, in_p, tile_out),
                         lambda j, t, rel, ntl, fst, lst: (rel[t], 0, j)),
            pl.BlockSpec((1, tile_out),
                         lambda j, t, rel, ntl, fst, lst: (0, j)),
        ],
        # output node-tile selected by prefetched node-tile id; column tile by j
        out_specs=pl.BlockSpec((tile_n, tile_out),
                               lambda j, t, rel, ntl, fst, lst: (ntl[t], j)),
    )

    out_pad = pl.pallas_call(
        kernel,
        out_shape=jax.ShapeDtypeStruct((n_pad, out_p), jnp.float32),
        grid_spec=grid_spec,
        compiler_params=pltpu.CompilerParams(
            dimension_semantics=("parallel", "arbitrary"),
            vmem_limit_bytes=int(vmem_limit),
        ),
    )(
        jnp.asarray(np.asarray(rel_ids, np.int32)),     # scalar prefetch
        jnp.asarray(np.asarray(ntile_ids, np.int32)),
        jnp.asarray(np.asarray(first_fl, np.int32)),
        jnp.asarray(np.asarray(last_fl, np.int32)),
        x_src,
        jnp.asarray(dst_all),
        w_pad,
        bias_pad,
    )

    return out_pad[:n_nodes, :out_feat]


def reference_rgcn(x, weight, w_comp, h_bias, src, dst, etypes, norm, apply_relu=True):
    nb, inf, outf = weight.shape
    if w_comp is not None and nb < w_comp.shape[0]:
        nr = w_comp.shape[0]
        w = (w_comp @ weight.reshape(nb, inf * outf)).reshape(nr, inf, outf)
    else:
        w = weight
    msgs = jnp.einsum('ei,eio->eo', x[src], w[etypes]) * norm.reshape(-1, 1)
    out = jnp.zeros((x.shape[0], outf), jnp.float32).at[dst].add(msgs)
    out = out + h_bias[None, :]
    if apply_relu:
        out = jnp.maximum(out, 0.0)
    return out


if __name__ == "__main__":
    # Small, deterministic synthetic problem consistent with the module.
    in_feat, out_feat = 32, 32
    num_rels, num_bases = 4, 2
    n_nodes, n_edges = 16, 64

    key = jax.random.PRNGKey(0)
    k_x, k_w, k_c, k_s, k_d, k_t, k_n = jax.random.split(key, 7)

    # Parameters (xavier-like init as in __init__; bias zeros).
    gain = float(np.sqrt(2.0))  # calculate_gain('relu')
    w_bound = gain * float(np.sqrt(6.0 / (in_feat * out_feat + num_bases * out_feat)))
    weight_bases = jax.random.uniform(k_w, (num_bases, in_feat, out_feat),
                                      minval=-w_bound, maxval=w_bound, dtype=jnp.float32)
    c_bound = gain * float(np.sqrt(6.0 / (num_rels + num_bases)))
    w_comp = jax.random.uniform(k_c, (num_rels, num_bases),
                                minval=-c_bound, maxval=c_bound, dtype=jnp.float32)
    h_bias = jnp.zeros((out_feat,), jnp.float32)

    # Graph (COO) + node features + edge norm.
    x = jax.random.normal(k_x, (n_nodes, in_feat), dtype=jnp.float32)
    src = jax.random.randint(k_s, (n_edges,), 0, n_nodes, dtype=jnp.int32)
    dst = jax.random.randint(k_d, (n_edges,), 0, n_nodes, dtype=jnp.int32)
    etypes = jax.random.randint(k_t, (n_edges,), 0, num_rels, dtype=jnp.int32)
    norm = jax.random.uniform(k_n, (n_edges, 1), dtype=jnp.float32)

    out = seastar_rgcn_layer1(x, weight_bases, w_comp, h_bias,
                              src, dst, etypes, norm, apply_relu=True)
    out = jax.block_until_ready(out)

    ref = reference_rgcn(x, weight_bases, w_comp, h_bias, src, dst, etypes, norm, True)
    # bf16 MXU operands -> loosened tolerance vs the f32 reference.
    np.testing.assert_allclose(np.asarray(out), np.asarray(ref), rtol=3e-2, atol=3e-2)

    print("KERNEL_OK")
</pallas_src>

<mosaic_0001>
module attributes {stable_mosaic.version = 11 : i64} {
  func.func @kernel(%arg0: i32, %arg1: i32, %arg2: memref<4xi32, #tpu.memory_space<smem>>, %arg3: memref<4xi32, #tpu.memory_space<smem>>, %arg4: memref<4xi32, #tpu.memory_space<smem>>, %arg5: memref<4xi32, #tpu.memory_space<smem>>, %arg6: memref<256x128xbf16, #tpu.memory_space<vmem>>, %arg7: memref<1x1x256xi32, #tpu.memory_space<vmem>>, %arg8: memref<1x128x128xbf16, #tpu.memory_space<vmem>>, %arg9: memref<1x128xf32, #tpu.memory_space<vmem>>, %arg10: memref<16x128xf32, #tpu.memory_space<vmem>>) attributes {dimension_semantics = [#tpu.dimension_semantics<parallel>, #tpu.dimension_semantics<arbitrary>], iteration_bounds = array<i64: 1, 4>, scalar_prefetch = 4 : i64, scratch_operands = 0 : i64, tpu.core_type = #tpu.core_type<tc>, window_params = [{transform_indices = @transform_0, window_bounds = array<i64: 256, 128>}, {transform_indices = @transform_1, window_bounds = array<i64: 1, 1, 256>}, {transform_indices = @transform_2, window_bounds = array<i64: 1, 128, 128>}, {transform_indices = @transform_3, window_bounds = array<i64: 1, 128>}, {transform_indices = @transform_4, window_bounds = array<i64: 16, 128>}]} {
    %0 = arith.index_cast %arg1 : i32 to index
    %1 = memref.load %arg4[%0] : memref<4xi32, #tpu.memory_space<smem>>
    %c1_i32 = arith.constant 1 : i32
    %2 = arith.cmpi eq, %1, %c1_i32 : i32
    %3 = arith.extui %2 : i1 to i32
    %c0_i32 = arith.constant 0 : i32
    %4 = arith.cmpi ne, %3, %c0_i32 : i32
    scf.if %4 {
      %cst_16 = arith.constant 0.000000e+00 : f32
      %28 = vector.broadcast %cst_16 : f32 to vector<16x128xf32>
      %c0_17 = arith.constant 0 : index
      %c0_18 = arith.constant 0 : index
      %29 = vector.load %arg10[%c0_17, %c0_18] : memref<16x128xf32, #tpu.memory_space<vmem>>, vector<16x128xf32>
      tpu.vector_store %arg10[%c0_17, %c0_18], %28 {strides = array<i32>} : memref<16x128xf32, #tpu.memory_space<vmem>>, vector<16x128xf32>,
    } else {
    }
    %c0 = arith.constant 0 : index
    %c0_0 = arith.constant 0 : index
    %5 = vector.load %arg6[%c0, %c0_0] : memref<256x128xbf16, #tpu.memory_space<vmem>>, vector<256x128xbf16>
    %c0_1 = arith.constant 0 : index
    %c0_2 = arith.constant 0 : index
    %c0_3 = arith.constant 0 : index
    %6 = vector.load %arg8[%c0_1, %c0_2, %c0_3] : memref<1x128x128xbf16, #tpu.memory_space<vmem>>, vector<1x128x128xbf16>
    %7 = vector.shape_cast %6 : vector<1x128x128xbf16> to vector<128x128xbf16>
    %cst = arith.constant dense<0.000000e+00> : vector<256x128xf32>
    %8 = tpu.matmul %5, %7, %cst {dimension_numbers = #tpu.dot_dimension_numbers<[1], [0], [0], [1], [0, 0, 1, 1], [], []>} : vector<256x128xbf16>, vector<128x128xbf16>, vector<256x128xf32> -> vector<256x128xf32>
    %9 = tpu.iota {dimensions = array<i32: 0>} : vector<16x256xi32>
    %c0_4 = arith.constant 0 : index
    %c0_5 = arith.constant 0 : index
    %c0_6 = arith.constant 0 : index
    %10 = vector.load %arg7[%c0_4, %c0_5, %c0_6] : memref<1x1x256xi32, #tpu.memory_space<vmem>>, vector<1x1x256xi32>
    %11 = vector.shape_cast %10 : vector<1x1x256xi32> to vector<1x256xi32>
    %12 = vector.broadcast %11 : vector<1x256xi32> to vector<16x256xi32>
    %13 = arith.cmpi eq, %9, %12 : vector<16x256xi32>
    %cst_7 = arith.constant 1.000000e+00 : f32
    %cst_8 = arith.constant 0.000000e+00 : f32
    %14 = vector.broadcast %cst_7 : f32 to vector<16x256xf32>
    %15 = vector.broadcast %cst_8 : f32 to vector<16x256xf32>
    %16 = arith.select %13, %14, %15 : vector<16x256xi1>, vector<16x256xf32>
    %17 = arith.truncf %16 : vector<16x256xf32> to vector<16x256xbf16>
    %c0_9 = arith.constant 0 : index
    %c0_10 = arith.constant 0 : index
    %18 = vector.load %arg10[%c0_9, %c0_10] : memref<16x128xf32, #tpu.memory_space<vmem>>, vector<16x128xf32>
    %19 = arith.truncf %8 : vector<256x128xf32> to vector<256x128xbf16>
    %cst_11 = arith.constant dense<0.000000e+00> : vector<16x128xf32>
    %20 = tpu.matmul %17, %19, %cst_11 {dimension_numbers = #tpu.dot_dimension_numbers<[1], [0], [0], [1], [0, 0, 1, 1], [], []>} : vector<16x256xbf16>, vector<256x128xbf16>, vector<16x128xf32> -> vector<16x128xf32>
    %21 = arith.addf %18, %20 : vector<16x128xf32>
    %c0_12 = arith.constant 0 : index
    %c0_13 = arith.constant 0 : index
    %22 = vector.load %arg10[%c0_12, %c0_13] : memref<16x128xf32, #tpu.memory_space<vmem>>, vector<16x128xf32>
    tpu.vector_store %arg10[%c0_12, %c0_13], %21 {strides = array<i32>} : memref<16x128xf32, #tpu.memory_space<vmem>>, vector<16x128xf32>,
    %23 = arith.index_cast %arg1 : i32 to index
    %24 = memref.load %arg5[%23] : memref<4xi32, #tpu.memory_space<smem>>
    %c1_i32_14 = arith.constant 1 : i32
    %25 = arith.cmpi eq, %24, %c1_i32_14 : i32
    %26 = arith.extui %25 : i1 to i32
    %c0_i32_15 = arith.constant 0 : i32
    %27 = arith.cmpi ne, %26, %c0_i32_15 : i32
    scf.if %27 {
      %c0_16 = arith.constant 0 : index
      %c0_17 = arith.constant 0 : index
      %28 = vector.load %arg10[%c0_16, %c0_17] : memref<16x128xf32, #tpu.memory_space<vmem>>, vector<16x128xf32>
      %c0_18 = arith.constant 0 : index
      %c0_19 = arith.constant 0 : index
      %29 = vector.load %arg9[%c0_18, %c0_19] : memref<1x128xf32, #tpu.memory_space<vmem>>, vector<1x128xf32>
      %30 = vector.broadcast %29 : vector<1x128xf32> to vector<16x128xf32>
      %31 = arith.addf %28, %30 : vector<16x128xf32>
      %cst_20 = arith.constant 0.000000e+00 : f32
      %32 = vector.broadcast %cst_20 : f32 to vector<16x128xf32>
      %33 = arith.maximumf %31, %32 : vector<16x128xf32>
      %c0_21 = arith.constant 0 : index
      %c0_22 = arith.constant 0 : index
      %34 = vector.load %arg10[%c0_21, %c0_22] : memref<16x128xf32, #tpu.memory_space<vmem>>, vector<16x128xf32>
      tpu.vector_store %arg10[%c0_21, %c0_22], %33 {strides = array<i32>} : memref<16x128xf32, #tpu.memory_space<vmem>>, vector<16x128xf32>,
    } else {
    }
    return
  }
  func.func @transform_0(%arg0: i32, %arg1: i32, %arg2: memref<4xi32, #tpu.memory_space<smem>>, %arg3: memref<4xi32, #tpu.memory_space<smem>>, %arg4: memref<4xi32, #tpu.memory_space<smem>>, %arg5: memref<4xi32, #tpu.memory_space<smem>>) -> (i32, i32) {
    %c0_i32 = arith.constant 0 : i32
    %c0_i32_0 = arith.constant 0 : i32
    return %arg1, %c0_i32 : i32, i32
  }
  func.func @transform_1(%arg0: i32, %arg1: i32, %arg2: memref<4xi32, #tpu.memory_space<smem>>, %arg3: memref<4xi32, #tpu.memory_space<smem>>, %arg4: memref<4xi32, #tpu.memory_space<smem>>, %arg5: memref<4xi32, #tpu.memory_space<smem>>) -> (i32, i32, i32) {
    %c0_i32 = arith.constant 0 : i32
    %c0_i32_0 = arith.constant 0 : i32
    %c0_i32_1 = arith.constant 0 : i32
    return %arg1, %c0_i32, %c0_i32_0 : i32, i32, i32
  }
  func.func @transform_2(%arg0: i32, %arg1: i32, %arg2: memref<4xi32, #tpu.memory_space<smem>>, %arg3: memref<4xi32, #tpu.memory_space<smem>>, %arg4: memref<4xi32, #tpu.memory_space<smem>>, %arg5: memref<4xi32, #tpu.memory_space<smem>>) -> (i32, i32, i32) {
    %0 = arith.index_cast %arg1 : i32 to index
    %1 = memref.load %arg2[%0] : memref<4xi32, #tpu.memory_space<smem>>
    %c0_i32 = arith.constant 0 : i32
    %c0_i32_0 = arith.constant 0 : i32
    return %1, %c0_i32, %arg0 : i32, i32, i32
  }
  func.func @transform_3(%arg0: i32, %arg1: i32, %arg2: memref<4xi32, #tpu.memory_space<smem>>, %arg3: memref<4xi32, #tpu.memory_space<smem>>, %arg4: memref<4xi32, #tpu.memory_space<smem>>, %arg5: memref<4xi32, #tpu.memory_space<smem>>) -> (i32, i32) {
    %c0_i32 = arith.constant 0 : i32
    %c0_i32_0 = arith.constant 0 : i32
    return %c0_i32, %arg0 : i32, i32
  }
  func.func @transform_4(%arg0: i32, %arg1: i32, %arg2: memref<4xi32, #tpu.memory_space<smem>>, %arg3: memref<4xi32, #tpu.memory_space<smem>>, %arg4: memref<4xi32, #tpu.memory_space<smem>>, %arg5: memref<4xi32, #tpu.memory_space<smem>>) -> (i32, i32) {
    %0 = arith.index_cast %arg1 : i32 to index
    %1 = memref.load %arg3[%0] : memref<4xi32, #tpu.memory_space<smem>>
    %c0_i32 = arith.constant 0 : i32
    return %1, %arg0 : i32, i32
  }
}

</mosaic_0001>

<bundles_post_ra>
// kernel: tpu_custom_call.1
= control target key start
LH: loop header
LB: loop body
LE: loop exit
PB: predicated region body
PF: predicated region fallthrough
CT: control target
= control target key end

     0   :  { %s1964_s0 = inlined_call_operand.hbm [shape: s32[4], index: 0, kind: input, shape index: {}]   ;;  %s1965_s4 = inlined_call_operand.hbm [shape: bf16[1024,128], index: 4, kind: input, shape index: {}]   ;;  %s1966_s5 = inlined_call_operand.vmem [shape: s32[4,1,256], index: 5, kind: input, shape index: {}]   ;;  %s1967_s6 = inlined_call_operand.hbm [shape: bf16[4,128,128], index: 6, kind: input, shape index: {}]   ;;  %s1968_s7 = inlined_call_operand.vmem [shape: f32[1,128], index: 7, kind: input, shape index: {}]   ;;  %s1969_s8 = inlined_call_operand.hbm [shape: f32[16,128], index: 8, kind: output, shape index: {}]   ;;  %s1970_s1 = inlined_call_operand.vmem [shape: s32[4], index: 1, kind: input, shape index: {}]   ;;  %s1971_s2 = inlined_call_operand.vmem [shape: s32[4], index: 2, kind: input, shape index: {}]   ;;  %s1972_s3 = inlined_call_operand.vmem [shape: s32[4], index: 3, kind: input, shape index: {}]  }
   0x1   :  { %1984 = sst [smem:[#allocation24_spill]] %s1965_s4  ;;  %s1251_s29 = scalar_lea.hbm %s1964_s0, 16 }
   0x2   :  { %1985 = sst [smem:[#allocation25_spill]] %s1968_s7  ;;  %p1252_p0 = scmp.ne.s32.totalorder %s1964_s0, %s1251_s29 }
   0x3   :  { %1986 = sst [smem:[#allocation26_spill]] %s1969_s8  ;;  %p1255_p1 = scmp.lt.u32.totalorder %s1251_s29, %s1964_s0 }
   0x5   :  { %p1257_p2 = pnand %p1255_p1, %p1252_p0 }
   0x7   :  { %1260 = shalt.err (!%p1257_p2)  }
   0x8   :  { %s1495_s12 = smov [#allocation3]   ;;  %s15_s17 = sshll.u32 %s1970_s1, 4  ;;  %s16_s17 = int_to_ptr.vmem [resolvable:$true] %s15_s17 }
   0x9   :  { %14 = dma.hbm_to_smem %s1964_s0, 16, %s1495_s12, [#allocation2] }
   0xa   :  { %s19_s20 = sshll.u32 %s1971_s2, 4  ;;  %s1261_s21 = scalar_lea.vmem %s16_s17, 16  ;;  %s20_s20 = int_to_ptr.vmem [resolvable:$true] %s19_s20 }
   0xb   :  { %p1262_p3 = scmp.ne.s32.totalorder %s16_s17, %s1261_s21  ;;  %p1266_p4 = scmp.lt.s32.totalorder %s16_s17, %s16_s17 }
   0xc   :  { %p1267_p5 = scmp.lt.s32.totalorder %s1261_s21, %s1261_s21 }
   0xe   :  { %p1268_p6 = por %p1267_p5, %p1266_p4 }
  0x10   :  { %p1269_p7 = pnand %p1268_p6, %p1262_p3 }
  0x12   :  { %1272 = shalt.err (!%p1269_p7)  }
  0x13   :  { %s1496_s22 = smov [#allocation4]   ;;  %s23_s24 = sshll.u32 %s1972_s3, 4  ;;  %s24_s24 = int_to_ptr.vmem [resolvable:$true] %s23_s24 }
  0x14   :  { %18 = dma.vmem_to_smem %s16_s17, 16, %s1496_s22, [#allocation2] }
  0x15   :  { %s1273_s1 = scalar_lea.vmem %s20_s20, 16  ;;  %p1278_p9 = scmp.lt.s32.totalorder %s20_s20, %s20_s20 }
  0x16   :  { %p1274_p8 = scmp.ne.s32.totalorder %s20_s20, %s1273_s1  ;;  %p1279_p10 = scmp.lt.s32.totalorder %s1273_s1, %s1273_s1 }
  0x18   :  { %p1280_p11 = por %p1279_p10, %p1278_p9 }
  0x1a   :  { %p1281_p12 = pnand %p1280_p11, %p1274_p8 }
  0x1c   :  { %1284 = shalt.err (!%p1281_p12)  }
  0x1d   :  { %s1497_s2 = smov [#allocation5]   ;;  %s1285_s25 = scalar_lea.vmem %s24_s24, 16 }
  0x1e   :  { %22 = dma.vmem_to_smem %s20_s20, 16, %s1497_s2, [#allocation2] }
  0x1f   :  { %p1286_p13 = scmp.ne.s32.totalorder %s24_s24, %s1285_s25  ;;  %p1290_p0 = scmp.lt.s32.totalorder %s24_s24, %s24_s24 }
  0x20   :  { %p1291_p1 = scmp.lt.s32.totalorder %s1285_s25, %s1285_s25 }
  0x22   :  { %p1292_p2 = por %p1291_p1, %p1290_p0 }
  0x24   :  { %p1293_p3 = pnand %p1292_p2, %p1286_p13 }
  0x26   :  { %1296 = shalt.err (!%p1293_p3)  }
  0x27   :  { %s1498_s26 = smov [#allocation6]  }
  0x28   :  { %26 = dma.vmem_to_smem %s24_s24, 16, %s1498_s26, [#allocation2] }
  0x29   :  { %1433 = dma.done.wait [#allocation2], 64 }
  0x2a   :  { %1434 = vsyncadd [#allocation2], 4294967232 }
  0x2b   :  { %28 = sfence }
  0x2c   :  { %29 = vsyncpa [#allocation8], 0 }
  0x2d   :  { %31 = vsyncpa [#allocation8 + $0x1], 0 }
  0x2e   :  { %32 = vsyncpa [#allocation11], 0 }
  0x2f   :  { %34 = vsyncpa [#allocation11 + $0x1], 0 }
  0x30   :  { %35 = vsyncpa [#allocation9], 0 }
  0x31   :  { %37 = vsyncpa [#allocation9 + $0x1], 0  ;;  %s1574_s3 = smov 0   ;;  %s1576_s27 = smov 0  }
  0x32   :  { %s1578_s28 = smov 0   ;;  %s1580_s29 = smov 0  }
  0x33   :  { %s1582_s30 = smov 0   ;;  %s1584_s9 = smov 0  }
  0x34   :  { %s1586_s10 = smov 0   ;;  %s1588_s11 = smov 0  }
  0x35   :  { %s1590_s12 = smov 0   ;;  %s1592_s13 = smov 0  }
  0x36   :  { %s1594_s14 = smov 0   ;;  %s1596_s15 = smov 0  }
  0x37 LB: > { %1987 = sst [smem:[#allocation20_spill]] %s1449_s3  ;;  %s947_s16 = sadd.s32 4294967295, %s1493_s15   ;;  %s1493_s15 = sphi %s1596_s15, %s43_s15   ;;  %s1489_s14 = sphi %s1594_s14, %s2019_s14   ;;  %s1485_s13 = sphi %s1592_s13, %s2018_s13   ;;  %s1481_s12 = sphi %s1590_s12, %s2028_s12   ;;  %s1477_s11 = sphi %s1588_s11, %s2027_s11   ;;  %s1473_s10 = sphi %s1586_s10, %s2026_s10   ;;  %s1469_s9 = sphi %s1584_s9, %s2025_s9   ;;  %s1465_s30 = sphi %s1582_s30, %s2024_s30   ;;  %s1461_s29 = sphi %s1580_s29, %s2023_s29   ;;  %s1457_s28 = sphi %s1578_s28, %s2022_s28   ;;  %s1453_s27 = sphi %s1576_s27, %s2021_s27   ;;  %s1449_s3 = sphi %s1574_s3, %s2020_s3  }
  0x38   : > { %1988 = sst [smem:[#allocation21_spill]] %s1489_s14  ;;  %s948_s17 = sadd.s32 4294967294, %s1493_s15  }
  0x39   : > { %s52_s18 = sadd.s32 1, %s1489_s14  ;;  %s62_s19 = sadd.s32 1, %s1481_s12 }
  0x3a   : > { %p53_p4 = scmp.ge.s32.totalorder %s52_s18, 4  ;;  %p69_p5 = scmp.ne.s32.totalorder %s1481_s12, %s1477_s11 }
  0x3b   : > { %p1976_p6 = scmp.eq.s32.totalorder %s1493_s15, 0  ;;  %p75_p7 = scmp.ne.s32.totalorder %s1477_s11, %s1473_s10 }
  0x3c   : > { %s2030_s18 = smov (%p53_p4, %s52_s18), 0  ;;  %p1648_p9 = scmp.eq.s32.totalorder %s947_s16, 0 }
  0x3d   : > { %1989 = sst [smem:[#allocation22_spill]] %s2030_s18  ;;  %p1644_p8 = por %p1976_p6, %p69_p5 }
  0x3e   : > { %s59_s22 = ssub.s32 %s1489_s14, %s2030_s18  ;;  %s1655_s0 = sld [smem:[#allocation3 + %s1489_s14]] }
  0x3f   : > { %p60_p10 = scmp.eq.s32.totalorder %s59_s22, 0  ;;  %p1659_p11 = por %p1648_p9, %p75_p7 }
  0x40   : > { %s167_s24 = sld [smem:[#allocation4 + %s1489_s14]]  ;;  %s174_s25 = sadd.s32 1, %s1457_s28 }
  0x41   : > { %s1992_s23 = scalar_select %p1659_p11, 1, 0 }
  0x42   : > { %s168_s1 = sld [smem:[#allocation4 + %s2030_s18]]  ;;  %p184_p12 = scmp.ne.s32.totalorder %s1457_s28, %s1453_s27 }
  0x43   : > { %s1666_s2 = scalar_select %p60_p10, %s1481_s12, %s62_s19  }
  0x44   : > { %p185_p13 = scmp.eq.s32.totalorder %s947_s16, 3  ;;  %p190_p0 = scmp.ne.s32.totalorder %s1453_s27, %s1449_s3 }
  0x45   : > { %1993 = sst [smem:[#allocation23_spill]] %s1666_s2  ;;  %p191_p1 = scmp.eq.s32.totalorder %s948_s17, 3 }
  0x46   : > { %p1673_p2 = por %p185_p13, %p184_p12  ;;  %p1975_p3 = scmp.lt.s32.totalorder %s1493_s15, 4 }
  0x47   : > { %p1678_p4 = por %p191_p1, %p190_p0  ;;  %s217_s19 = sand.u32 1, %s1481_s12  }
  0x48   : > { %s1994_s26 = scalar_select %p1673_p2, 1, 0 }
  0x49   : > { %s169_s10 = ssub.s32 %s167_s24, %s168_s1  ;;  %s952_s2 = sshll.u32 %s217_s19, 7 }
  0x4a   : > { %s1995_s22 = scalar_select %p1678_p4, 1, 0 }
  0x4b   : > { %p172_p5 = scmp.eq.s32.totalorder %s169_s10, 0  ;;  %s999_s16 = sshll.u32 %s1489_s14, 11 }
  0x4c   : > { %s1996_s4 = sld [smem:[#allocation24_spill]]  ;;  %s221_s24 = scalar_lea.vmem [#allocation7], %s952_s2 }
  0x4d   : > { %s1684_s8 = scalar_select %p172_p5, %s1457_s28, %s174_s25  }
  0x4e   : > { %s228_s1 = sshll.u32 %s221_s24, 4  ;;  %p1698_p7 = pnand %p1975_p3, %p1644_p8  ;;  %s1692_s1 = int_to_ptr.vmem [resolvable:$true] %s228_s1 }
  0x4f   : > { %s1703_s7 = scalar_lea.sflag [#allocation8], %s217_s19 }
  0x50   : > { %p1299_p13 = pneg %p1698_p7 }
  0x52   : > { %s1690_s17 = scalar_lea.hbm %s1996_s4, %s999_s16  ;;  %s1302_s25 = scalar_lea.hbm %s1996_s4, 8192 }
  0x53   : > { %s1297_s3 = scalar_lea.hbm %s1690_s17, 2048  ;;  %p1303_p8 = scmp.lt.u32.totalorder %s1690_s17, %s1996_s4 }
  0x54   : > { %p1298_p12 = scmp.ne.s32.totalorder %s1690_s17, %s1297_s3  ;;  %p1304_p5 = scmp.lt.u32.totalorder %s1302_s25, %s1297_s3 }
  0x55   : > { %p1306_p6 = scmp.lt.u32.totalorder %s1297_s3, %s1690_s17 }
  0x56   : > { %p1300_p0 = pnand %p1299_p13, %p1298_p12  ;;  %p1305_p3 = por %p1304_p5, %p1303_p8 }
  0x58   : > { %p1301_p1 = pneg %p1300_p0  ;;  %p1307_p10 = por %p1306_p6, %p1305_p3 }
  0x5a   : > { %p1308_p4 = pnand %p1307_p10, %p1301_p1 }
  0x5c   : > { %1311 = shalt.err (!%p1308_p4)
}
  0x5d   : > { %s1312_s19 = scalar_lea.vmem %s1692_s1, 2048  ;;  %s1499_s2 = smov [#allocation7]  }
  0x5e   : > { %p1313_p12 = scmp.ne.s32.totalorder %s1692_s1, %s1312_s19  ;;  %s1317_s20 = sshll.u32 %s1499_s2, 4  ;;  %s1318_s20 = int_to_ptr.vmem [resolvable:$false] %s1317_s20 }
  0x5f   : > { %s1319_s16 = scalar_lea.vmem %s1318_s20, 4096  ;;  %p1320_p11 = scmp.lt.s32.totalorder %s1692_s1, %s1318_s20 }
  0x60   : > { %p1315_p0 = pnand %p1313_p12, %p1299_p13  ;;  %p1321_p8 = scmp.lt.s32.totalorder %s1319_s16, %s1312_s19 }
  0x62   : > { %p1316_p2 = pneg %p1315_p0  ;;  %p1322_p5 = por %p1321_p8, %p1320_p11 }
  0x64   : > { %p1323_p6 = pnand %p1322_p5, %p1316_p2 }
  0x66   : > { %1326 = shalt.err (!%p1323_p6)
}
  0x67   : > { %s1979_s3 = smov 64   ;;  %s1980_s25 = smov 4  }
  0x68   : > { %1109 = dma.hbm_to_vmem [thread:$0]  (!%p1698_p7), %s1690_s17, 2048, %s1692_s1, %s1703_s7, %s1979_s3, %s1979_s3, %s1980_s25  }
  0x69   : > { %p266_p11 = scmp.lt.s32.totalorder %s1493_s15, 5  ;;  %p1998_p2 = scmp.ge.s32.totalorder %s1493_s15, 1 }
  0x6a   : > { %s112_s19 = sld [smem:[#allocation3 + %s2030_s18]]  ;;  %p125_p4 = scmp.ne.s32.totalorder %s1469_s9, %s1465_s30 }
  0x6b   : > { %p1737_p3 = pnand %p1998_p2, %p266_p11  ;;  %p131_p10 = scmp.ne.s32.totalorder %s1465_s30, %s1461_s29 }
  0x6c   : > { %s245_s2 = sand.u32 1, %s1469_s9   ;;  %p2001_p1 = scmp.eq.s32.totalorder %s1493_s15, 0 }
  0x6d   : > { %p1748_p13 = por %p131_p10, %p1648_p9  ;;  %s118_s17 = sadd.s32 1, %s1469_s9 }
  0x6e   : > { %p127_p7 = por %p125_p4, %p2001_p1  ;;  %s955_s7 = sshll.u32 %s245_s2, 6 }
  0x6f   : > { %s2000_s10 = scalar_select %p1748_p13, 1, 0 }
  0x70   : > { %s113_s1 = ssub.s32 %s1655_s0, %s112_s19  ;;  %p2002_p0 = scmp.lt.s32.totalorder %s1493_s15, 4 }
  0x71   : > { %p116_p12 = scmp.eq.s32.totalorder %s113_s1, 0  ;;  %s249_s25 = scalar_lea.vmem [#allocation10], %s955_s7 }
  0x72   : > { %p1759_p8 = pnand %p2002_p0, %p127_p7  ;;  %p2004_p9 = pmov %p2002_p0 }
  0x73   : > { %s1097_s29 = scalar_select %p127_p7, [#allocation3], [#allocation13] }
  0x74   : > { %s1764_s21 = scalar_select %p116_p12, %s1469_s9, %s118_s17  }
  0x75   : > { %s1098_s16 = scalar_select %p127_p7, %s1489_s14, 0 }
  0x76   : > { %s2032_s29 = smov (!%p2004_p9, %s1097_s29), [#allocation15]  ;;  %p2005_p5 = pmov %p2002_p0 }
  0x77   : > { %s258_s0 = sshll.u32 %s249_s25, 4  ;;  %s1778_s17 = scalar_lea.sflag [#allocation11], %s245_s2  ;;  %s1771_s0 = int_to_ptr.vmem [resolvable:$true] %s258_s0 }
  0x78   : > { %s2034_s16 = smov (!%p2005_p5, %s1098_s16), 0  ;;  %p1329_p11 = pneg %p1759_p8 }
  0x79   : > { %s250_s3 = sld [smem:[%s2032_s29 + %s2034_s16]]  ;;  %s1332_s4 = scalar_lea.hbm %s1967_s6, 4096 }
  0x7f   : > { %s1000_s19 = sshll.u32 %s250_s3, 10 }
  0x80   : > { %s1776_s18 = scalar_lea.hbm %s1967_s6, %s1000_s19 }
  0x81   : > { %s1327_s14 = scalar_lea.hbm %s1776_s18, 1024  ;;  %p1333_p10 = scmp.lt.u32.totalorder %s1776_s18, %s1967_s6 }
  0x82   : > { %p1328_p6 = scmp.ne.s32.totalorder %s1776_s18, %s1327_s14  ;;  %p1334_p1 = scmp.lt.u32.totalorder %s1332_s4, %s1327_s14 }
  0x83   : > { %p1336_p12 = scmp.lt.u32.totalorder %s1327_s14, %s1776_s18 }
  0x84   : > { %p1330_p2 = pnand %p1329_p11, %p1328_p6  ;;  %p1335_p7 = por %p1334_p1, %p1333_p10 }
  0x86   : > { %p1331_p4 = pneg %p1330_p2  ;;  %p1337_p0 = por %p1336_p12, %p1335_p7 }
  0x88   : > { %p1338_p9 = pnand %p1337_p0, %p1331_p4 }
  0x8a   : > { %1341 = shalt.err (!%p1338_p9)
}
  0x8b   : > { %s1342_s2 = scalar_lea.vmem %s1771_s0, 1024  ;;  %s1502_s16 = smov [#allocation10]  }
  0x8c   : > { %p1343_p5 = scmp.ne.s32.totalorder %s1771_s0, %s1342_s2  ;;  %s1347_s19 = sshll.u32 %s1502_s16, 4  ;;  %s1348_s19 = int_to_ptr.vmem [resolvable:$false] %s1347_s19 }
  0x8d   : > { %s1349_s1 = scalar_lea.vmem %s1348_s19, 2048  ;;  %p1350_p13 = scmp.lt.s32.totalorder %s1771_s0, %s1348_s19 }
  0x8e   : > { %p1345_p6 = pnand %p1343_p5, %p1329_p11  ;;  %p1351_p10 = scmp.lt.s32.totalorder %s1349_s1, %s1342_s2 }
  0x90   : > { %p1346_p2 = pneg %p1345_p6  ;;  %p1352_p1 = por %p1351_p10, %p1350_p13 }
  0x92   : > { %p1353_p7 = pnand %p1352_p1, %p1346_p2 }
  0x94   : > { %1356 = shalt.err (!%p1353_p7)
}
  0x95   : > { %s2006_s14 = smov 4   ;;  %s2007_s3 = smov 64  }
  0x96   : > { %1114 = dma.hbm_to_vmem [thread:$0]  (!%p1759_p8), %s1776_s18, 1024, %s1771_s0, %s1778_s17, %s2007_s3, %s2007_s3, %s2006_s14  }
  0x97   : > { %270 = sbr.rel (%p1737_p3) target bundleno = 753 (0x2f1), region = 36  ;;  %s272_s25 = sand.u32 (!%p1737_p3), 1, %s1477_s11  }
  0x98   : > { %s959_s4 = sshll.u32 (!%p1737_p3), %s272_s25, 7  ;;  %s273_s7 = scalar_lea.sflag (!%p1737_p3), [#allocation8], %s272_s25 }
  0x99   : > { %s1812_s29 = scalar_lea.vmem (!%p1737_p3), [#allocation7], %s959_s4  ;;  %p2008_p13 = scmp.ne.s32.totalorder (!%p1737_p3), %s1992_s23, 0 }
  0x9e   : > { %1436 = dma.done.wait (%p2008_p13), %s273_s7, 2048  }
  0x9f   : > { %1438 = vsyncadd (%p2008_p13), %s273_s7, 4294965248  ;;  %s281_s20 = sand.u32 1, %s1465_s30   ;;  %p2009_p3 = scmp.ne.s32.totalorder %s2000_s10, 0 }
  0xa0   : > { %s960_s2 = sshll.u32 %s281_s20, 6  ;;  %s282_s18 = scalar_lea.sflag [#allocation11], %s281_s20 }
  0xa1   : > { %s1819_s0 = scalar_lea.vmem [#allocation10], %s960_s2 }
  0xa2   : > { %1440 = dma.done.wait (%p2009_p3), %s282_s18, 1024  }
  0xa3   : > { %1442 = vsyncadd (%p2009_p3), %s282_s18, 4294966272  ;;  %s319_s24 = sand.u32 1, %s1453_s27   ;;  %p323_p8 = scmp.lt.s32.totalorder %s1485_s13, 3 }
  0xa4   : > { %s334_s23 = sld [smem:[#allocation5 + %s1485_s13]]  ;;  %s961_s17 = sshll.u32 %s319_s24, 4 }
  0xa5   : > { %s324_s16 = scalar_select %p323_p8, %s1485_s13, 3 }
  0xa6   : > { %s1836_s25 = scalar_lea.vmem [#allocation12], %s961_s17 }
  0xa7   : > { %s962_s19 = sshll.u32 %s324_s16, 1 }
  0xa8   : > { %s1834_s3 = scalar_lea.vmem %s1966_s5, %s962_s19 }
  0xaa   : > { %p963_p11 = scmp.ne.s32.totalorder %s334_s23, 1 }
  0xab   : > { %v1503_v0 = vmov (!%p963_p11), 0.0  }
  0xac   : > { %338 = sbr.rel (%p963_p11) target bundleno = 179 (0xb3), region = 48  ;;  %339 = vst [vmem:[%s1836_s25] sm:$0xff] (!%p963_p11), %v1503_v0  ;;  %340 = vst [vmem:[%s1836_s25 + $0x8] sm:$0xff] (!%p963_p11), %v1503_v0 }
  0xb3 PF: > { %v1227_v1 = vld [vmem:[%s1819_s0] sm:$0xff]   ;;  %v1228_v2 = vld [vmem:[%s1819_s0 + $0x8] sm:$0xff]   ;;  %v1229_v3 = vld [vmem:[%s1819_s0 + $0x10] sm:$0xff]   ;;  %v694_v25 = vlaneseq  ;;  %v1504_v33 = vmov 1.0|1.0   ;;  %s779_s10 = sld [smem:[#allocation6 + %s1485_s13]] }
  0xb4   : > { %1048 = vmatprep.subr.bf16.mxu0 %v1227_v1  ;;  %v1230_v4 = vld [vmem:[%s1819_s0 + $0x18] sm:$0xff]   ;;  %v1235_v5 = vld [vmem:[%s1812_s29] sm:$0xff]   ;;  %v1232_v7 = vld [vmem:[%s1819_s0 + $0x28] sm:$0xff]  }
  0xb5   : > { %1049 = vmatpush3.bf16.msra.mxu0 %v1227_v1  ;;  %1064 = vmatprep.mubr.bf16.mxu0 %v1235_v5  ;;  %v1231_v6 = vld [vmem:[%s1819_s0 + $0x20] sm:$0xff]   ;;  %v1233_v8 = vld [vmem:[%s1819_s0 + $0x30] sm:$0xff]   ;;  %v1234_v9 = vld [vmem:[%s1819_s0 + $0x38] sm:$0xff]   ;;  %v695_v26 = vshrl.u32 %v694_v25, 7 }
  0xb6   : > { %1050 = vmatprep.subr.bf16.mxu0 %v1228_v2  ;;  %v1236_v10 = vld [vmem:[%s1812_s29 + $0x8] sm:$0xff]   ;;  %v1237_v11 = vld [vmem:[%s1812_s29 + $0x10] sm:$0xff]   ;;  %v1238_v12 = vld [vmem:[%s1812_s29 + $0x18] sm:$0xff]  }
  0xb7   : > { %v1239_v13 = vld [vmem:[%s1812_s29 + $0x20] sm:$0xff]   ;;  %v1240_v14 = vld [vmem:[%s1812_s29 + $0x28] sm:$0xff]   ;;  %v1241_v15 = vld [vmem:[%s1812_s29 + $0x30] sm:$0xff]   ;;  %v704_v27 = vsub.s32 1, %v695_v26  ;;  %v700_v29 = vsub.s32 0, %v695_v26  ;;  %v696_v30 = vadd.s32 8, %v695_v26 }
  0xb8   : > { %v1242_v16 = vld [vmem:[%s1812_s29 + $0x38] sm:$0xff]   ;;  %v1243_v17 = vld [vmem:[%s1812_s29 + $0x40] sm:$0xff]   ;;  %v1244_v18 = vld [vmem:[%s1812_s29 + $0x48] sm:$0xff]  }
  0xb9   : > { %1051 = vmatpush3.bf16.msra.mxu0 %v1228_v2  ;;  %v1245_v19 = vld [vmem:[%s1812_s29 + $0x50] sm:$0xff]   ;;  %v1246_v20 = vld [vmem:[%s1812_s29 + $0x58] sm:$0xff]   ;;  %v1247_v21 = vld [vmem:[%s1812_s29 + $0x60] sm:$0xff]   ;;  %p992_p4 = scmp.ne.s32.totalorder %s779_s10, 1 }
  0xba   : > { %1052 = vmatprep.subr.bf16.mxu0 %v1229_v3  ;;  %v1248_v22 = vld [vmem:[%s1812_s29 + $0x68] sm:$0xff]   ;;  %v1249_v23 = vld [vmem:[%s1812_s29 + $0x70] sm:$0xff]   ;;  %v1250_v24 = vld [vmem:[%s1812_s29 + $0x78] sm:$0xff]   ;;  %s2012_s29 = sld [smem:[#allocation25_spill]] (!%p992_p4) }
  0xbb   : > { %v697_v28 = vld [vmem:[%s1834_s3] sm:$0x3] }
  0xbc   : > { %v705_v31 = vrot.slane %v697_v28, %v704_v27  ;;  %v701_v32 = vrot.slane %v697_v28, %v700_v29 }
  0xbd   : > { %1053 = vmatpush3.bf16.msra.mxu0 %v1229_v3 }
  0xbe   : > { %1054 = vmatprep.subr.bf16.mxu0 %v1230_v4  ;;  %vm707_vm0 = vcmp.eq.s32.totalorder %v695_v26, %v705_v31  ;;  %vm709_vm1 = vcmp.eq.s32.totalorder %v696_v30, %v705_v31  ;;  %vm706_vm3 = vcmp.eq.s32.totalorder %v695_v26, %v701_v32  ;;  %vm708_vm4 = vcmp.eq.s32.totalorder %v696_v30, %v701_v32 }
  0xbf   : > { %vm988_vm2 = vmpackc.low %vm709_vm1, %vm707_vm0 }
  0xc0   : > { %989 = vmatprep.mubr.msk.bf16.mxu1 %vm988_vm2, %v1504_v33  ;;  %vm1866_vm5 = vmpackc.low %vm708_vm4, %vm706_vm3  ;;  %v993_v30 = vld [vmem:[%s2012_s29] ss:$0 sm:$0xff] (!%p992_p4) }
  0xc1   : > { %1055 = vmatpush3.bf16.msra.mxu0 %v1230_v4 }
  0xc2   : > { %1056 = vmatprep.subr.bf16.mxu0 %v1231_v6 }
  0xc5   : > { %1057 = vmatpush3.bf16.msra.mxu0 %v1231_v6 }
  0xc6   : > { %1058 = vmatprep.subr.bf16.mxu0 %v1232_v7 }
  0xc9   : > { %1059 = vmatpush3.bf16.msra.mxu0 %v1232_v7 }
  0xca   : > { %1060 = vmatprep.subr.bf16.mxu0 %v1233_v8 }
  0xcd   : > { %1061 = vmatpush3.bf16.msra.mxu0 %v1233_v8 }
  0xce   : > { %1062 = vmatprep.subr.bf16.mxu0 %v1234_v9 }
  0xd1   : > { %1063 = vmatpush3.bf16.msra.mxu0 %v1234_v9 }
  0xd4   : > { %1065 = vmatmul.mubr.bf16.vlgmr.msra.gmra.mrb[0].mxu0 %v1236_v10 }
  0xd5   : > { %1068 = vmatprep.mubr.bf16.mxu0 %v1237_v11 }
  0xdc   : > { %1069 = vmatmul.mubr.bf16.gmra.mrb[4].mxu0 %v1238_v12 }
  0xdd   : > { %1072 = vmatprep.mubr.bf16.mxu0 %v1239_v13 }
  0xe4   : > { %1073 = vmatmul.mubr.bf16.gmra.mrb[8].mxu0 %v1240_v14 }
  0xe5   : > { %1076 = vmatprep.mubr.bf16.mxu0 %v1241_v15 }
  0xec   : > { %1077 = vmatmul.mubr.bf16.gmra.mrb[12].mxu0 %v1242_v16 }
  0xed   : > { %1080 = vmatprep.mubr.bf16.mxu0 %v1243_v17 }
  0xf4   : > { %1081 = vmatmul.mubr.bf16.gmra.mrb[16].mxu0 %v1244_v18 }
  0xf5   : > { %1084 = vmatprep.mubr.bf16.mxu0 %v1245_v19 }
  0xfc   : > { %1085 = vmatmul.mubr.bf16.gmra.mrb[20].mxu0 %v1246_v20  ;;  %v716_v20 = vld [vmem:[%s1836_s25] sm:$0xff] }
  0xfd   : > { %1088 = vmatprep.mubr.bf16.mxu0 %v1247_v21 }
 0x104   : > { %1089 = vmatmul.mubr.bf16.gmra.mrb[24].mxu0 %v1248_v22 }
 0x105   : > { %1092 = vmatprep.mubr.bf16.mxu0 %v1249_v23 }
 0x10c   : > { %1093 = vmatmul.mubr.bf16.gmra.mrb[28].mxu0 %v1250_v24  ;;  %v717_v24 = vld [vmem:[%s1836_s25 + $0x8] sm:$0xff] }
 0x1a7   : > { %v1066_v35 = vpop.f32.mrb[0].mxu0 }
 0x1a8   : > { %v567_v36 = vpop.f32.mrb[1].mxu0 }
 0x1a9   : > { %v1067_v37 = vpop.f32.mrb[2].mxu0 }
 0x1aa   : > { %v719_v38 = vpack.c.bf16 %v1067_v37, %v1066_v35  ;;  %v570_v39 = vpop.f32.mrb[3].mxu0 }
 0x1ab   : > { %v718_v40 = vpack.c.bf16 %v570_v39, %v567_v36 }
 0x1af   : > { %v1070_v41 = vpop.f32.mrb[4].mxu0 }
 0x1b0   : > { %v583_v42 = vpop.f32.mrb[5].mxu0 }
 0x1b1   : > { %v1071_v43 = vpop.f32.mrb[6].mxu0 }
 0x1b2   : > { %v721_v44 = vpack.c.bf16 %v1071_v43, %v1070_v41  ;;  %v586_v45 = vpop.f32.mrb[7].mxu0 }
 0x1b3   : > { %v720_v46 = vpack.c.bf16 %v586_v45, %v583_v42 }
 0x1b7   : > { %v1074_v47 = vpop.f32.mrb[8].mxu0 }
 0x1b8   : > { %v599_v48 = vpop.f32.mrb[9].mxu0 }
 0x1b9   : > { %v1075_v49 = vpop.f32.mrb[10].mxu0 }
 0x1ba   : > { %v723_v50 = vpack.c.bf16 %v1075_v49, %v1074_v47  ;;  %v602_v51 = vpop.f32.mrb[11].mxu0 }
 0x1bb   : > { %v722_v52 = vpack.c.bf16 %v602_v51, %v599_v48 }
 0x1bf   : > { %v1078_v53 = vpop.f32.mrb[12].mxu0 }
 0x1c0   : > { %v615_v54 = vpop.f32.mrb[13].mxu0 }
 0x1c1   : > { %v1079_v55 = vpop.f32.mrb[14].mxu0 }
 0x1c2   : > { %v725_v56 = vpack.c.bf16 %v1079_v55, %v1078_v53  ;;  %v618_v57 = vpop.f32.mrb[15].mxu0 }
 0x1c3   : > { %v724_v58 = vpack.c.bf16 %v618_v57, %v615_v54 }
 0x1c7   : > { %v1082_v59 = vpop.f32.mrb[16].mxu0 }
 0x1c8   : > { %v631_v60 = vpop.f32.mrb[17].mxu0 }
 0x1c9   : > { %v1083_v61 = vpop.f32.mrb[18].mxu0 }
 0x1ca   : > { %v727_v62 = vpack.c.bf16 %v1083_v61, %v1082_v59  ;;  %v634_v63 = vpop.f32.mrb[19].mxu0 }
 0x1cb   : > { %v726_v0 = vpack.c.bf16 %v634_v63, %v631_v60 }
 0x1cd   : > { %1026 = vmatprep.subr.bf16.mxu1 %v726_v0 }
 0x1ce   : > { %1027 = vmatpush3.bf16.msra.mxu1 %v718_v40 }
 0x1cf   : > { %v1086_v1 = vpop.f32.mrb[20].mxu0  ;;  %1028 = vmatprep.subr.bf16.mxu1 %v727_v62 }
 0x1d0   : > { %v647_v2 = vpop.f32.mrb[21].mxu0 }
 0x1d1   : > { %v1087_v3 = vpop.f32.mrb[22].mxu0 }
 0x1d2   : > { %v729_v4 = vpack.c.bf16 %v1087_v3, %v1086_v1  ;;  %v650_v5 = vpop.f32.mrb[23].mxu0  ;;  %1029 = vmatpush3.bf16.msra.mxu1 %v719_v38 }
 0x1d3   : > { %v728_v6 = vpack.c.bf16 %v650_v5, %v647_v2 }
 0x1d5   : > { %1030 = vmatprep.subr.bf16.mxu1 %v728_v6 }
 0x1d6   : > { %1031 = vmatpush3.bf16.msra.mxu1 %v720_v46 }
 0x1d7   : > { %v1090_v7 = vpop.f32.mrb[24].mxu0  ;;  %1032 = vmatprep.subr.bf16.mxu1 %v729_v4 }
 0x1d8   : > { %v663_v8 = vpop.f32.mrb[25].mxu0 }
 0x1d9   : > { %v1091_v9 = vpop.f32.mrb[26].mxu0 }
 0x1da   : > { %v731_v10 = vpack.c.bf16 %v1091_v9, %v1090_v7  ;;  %v666_v11 = vpop.f32.mrb[27].mxu0  ;;  %1033 = vmatpush3.bf16.msra.mxu1 %v721_v44 }
 0x1db   : > { %v730_v12 = vpack.c.bf16 %v666_v11, %v663_v8 }
 0x1dd   : > { %1034 = vmatprep.subr.bf16.mxu1 %v730_v12 }
 0x1de   : > { %1035 = vmatpush3.bf16.msra.mxu1 %v722_v52 }
 0x1df   : > { %v1094_v13 = vpop.f32.mrb[28].mxu0  ;;  %1036 = vmatprep.subr.bf16.mxu1 %v731_v10 }
 0x1e0   : > { %v679_v14 = vpop.f32.mrb[29].mxu0 }
 0x1e1   : > { %v1095_v15 = vpop.f32.mrb[30].mxu0 }
 0x1e2   : > { %v733_v16 = vpack.c.bf16 %v1095_v15, %v1094_v13  ;;  %v682_v17 = vpop.f32.mrb[31].mxu0  ;;  %1037 = vmatpush3.bf16.msra.mxu1 %v723_v50 }
 0x1e3   : > { %v732_v18 = vpack.c.bf16 %v682_v17, %v679_v14 }
 0x1e5   : > { %1038 = vmatprep.subr.bf16.mxu1 %v732_v18 }
 0x1e6   : > { %1039 = vmatpush3.bf16.msra.mxu1 %v724_v58 }
 0x1e7   : > { %1040 = vmatprep.subr.bf16.mxu1 %v733_v16 }
 0x1ea   : > { %1041 = vmatpush3.bf16.msra.mxu1 %v725_v56 }
 0x1ed   : > { %991 = vmatmul.mubr.msk.bf16.vlgmr.msra.gmra.mrb[0].mxu1 %vm1866_vm5, %v1504_v33 }
 0x2c0   : > { %v1042_v19 = vpop.f32.mrb[0].mxu1 }
 0x2c1   : > { %v1043_v21 = vpop.f32.mrb[1].mxu1 }
 0x2c2   : > { %v1044_v22 = vadd.f32 %v1043_v21, %v1042_v19  ;;  %v1045_v23 = vpop.f32.mrb[2].mxu1  ;;  %783 = sbr.rel (%p992_p4) target bundleno = 725 (0x2d5), region = 52 }
 0x2c3   : > { %v1046_v25 = vpop.f32.mrb[3].mxu1 }
 0x2c4   : > { %v775_v26 = vadd.f32 %v1044_v22, %v716_v20  ;;  %v1047_v27 = vadd.f32 %v1046_v25, %v1045_v23 }
 0x2c6   : > { %777 = vst [vmem:[%s1836_s25] sm:$0xff] %v775_v26  ;;  %v776_v28 = vadd.f32 %v1047_v27, %v717_v24 }
 0x2c8   : > { %778 = vst [vmem:[%s1836_s25 + $0x8] sm:$0xff] %v776_v28 }
 0x2cd   : > { %v784_v29 = vld [vmem:[%s1836_s25] sm:$0xff] }
 0x2ce   : > { %v793_v32 = vadd.f32 %v993_v30, %v784_v29 }
 0x2cf   : > { %v785_v31 = vld [vmem:[%s1836_s25 + $0x8] sm:$0xff] }
 0x2d0   : > { %v794_v33 = vadd.f32 %v993_v30, %v785_v31  ;;  %v795_v34 = vmax.f32 %v793_v32, 0.0 }
 0x2d2   : > { %v796_v35 = vmax.f32 %v794_v33, 0.0  ;;  %797 = vst [vmem:[%s1836_s25] sm:$0xff] %v795_v34 }
 0x2d4   : > { %798 = vst [vmem:[%s1836_s25 + $0x8] sm:$0xff] %v796_v35 }
 0x2d5 PF: > { %p2013_p12 = scmp.ne.s32.totalorder %s1994_s26, 0  ;;  %s815_s18 = sshll.u32 %s1836_s25, 4  ;;  %s1891_s18 = int_to_ptr.vmem [resolvable:$true] %s815_s18 }
 0x2d6   : > { %s2014_s16 = sld [smem:[#allocation26_spill]]  ;;  %s1900_s1 = scalar_lea.sflag [#allocation9], %s319_s24 }
 0x2d7   : > { %s1102_s20 = scalar_select %p2013_p12, [#allocation4], [#allocation14] }
 0x2d8   : > { %s2036_s13 = smov (!%p2013_p12, %s1485_s13), 0  ;;  %s1357_s14 = scalar_lea.vmem %s1891_s18, 256 }
 0x2d9   : > { %s807_s2 = sld [smem:[%s1102_s20 + %s2036_s13]]  ;;  %p1358_p0 = scmp.ne.s32.totalorder %s1891_s18, %s1357_s14 }
 0x2da   : > { %s1505_s13 = smov [#allocation12]  }
 0x2db   : > { %p1359_p9 = pnand %p1358_p0, %p2013_p12  ;;  %s1361_s3 = sshll.u32 %s1505_s13, 4  ;;  %s1362_s3 = int_to_ptr.vmem [resolvable:$false] %s1361_s3 }
 0x2dc   : > { %s1363_s25 = scalar_lea.vmem %s1362_s3, 512  ;;  %p1364_p6 = scmp.lt.s32.totalorder %s1891_s18, %s1362_s3 }
 0x2dd   : > { %p1360_p5 = pneg %p1359_p9  ;;  %p1365_p2 = scmp.lt.s32.totalorder %s1363_s25, %s1357_s14 }
 0x2df   : > { %s1001_s0 = sshll.u32 %s807_s2, 8  ;;  %p1366_p10 = por %p1365_p2, %p1364_p6 }
 0x2e0   : > { %s1896_s19 = scalar_lea.hbm %s2014_s16, %s1001_s0 }
 0x2e1   : > { %p1367_p1 = pnand %p1366_p10, %p1360_p5 }
 0x2e3   : > { %1370 = shalt.err (!%p1367_p1)
}
 0x2e4   : > { %s1371_s24 = scalar_lea.hbm %s1896_s19, 256  ;;  %s1375_s7 = scalar_lea.hbm %s2014_s16, 256 }
 0x2e5   : > { %p1372_p7 = scmp.ne.s32.totalorder %s1896_s19, %s1371_s24  ;;  %p1376_p8 = scmp.lt.u32.totalorder %s1896_s19, %s2014_s16 }
 0x2e6   : > { %p1377_p11 = scmp.lt.u32.totalorder %s1375_s7, %s1371_s24  ;;  %p1379_p0 = scmp.lt.u32.totalorder %s1371_s24, %s1896_s19 }
 0x2e7   : > { %p1373_p13 = pnand %p1372_p7, %p2013_p12 }
 0x2e8   : > { %p1378_p4 = por %p1377_p11, %p1376_p8 }
 0x2e9   : > { %p1374_p3 = pneg %p1373_p13 }
 0x2ea   : > { %p1380_p9 = por %p1379_p0, %p1378_p4 }
 0x2ec   : > { %p1381_p5 = pnand %p1380_p9, %p1374_p3 }
 0x2ee   : > { %1384 = shalt.err (!%p1381_p5)
}
 0x2ef   : > { %s1506_s2 = smov 128   ;;  %s1507_s0 = smov 8  }
 0x2f0   : > { %1104 = dma.vmem_to_hbm [thread:$0]  (%p2013_p12), %s1891_s18, 256, %s1896_s19, %s1900_s1, %s1506_s2, %s1506_s2, %s1507_s0  }
 0x2f1 PF: > { %s2015_s23 = sld [smem:[#allocation20_spill]]  ;;  %p1120_p6 = scmp.ge.s32.totalorder %s1493_s15, 2 }
 0x2f2   : > { %p2016_p2 = scmp.ne.s32.totalorder %s1995_s22, 0 }
 0x2f4   : > { %p1116_p10 = pnand %p1120_p6, %p2016_p2 }
 0x2f7   : > { %s830_s17 = sand.u32 1, %s2015_s23  }
 0x2f8   : > { %s831_s14 = scalar_lea.sflag [#allocation9], %s830_s17 }
 0x2f9   : > { %1444 = dma.done.wait (!%p1116_p10), %s831_s14, 256  }
 0x2fa   : > { %1446 = vsyncadd (!%p1116_p10), %s831_s14, 4294967040  ;;  %s43_s15 = sadd.s32 1, %s1493_s15   ;;  %s2017_s26 = sld [smem:[#allocation23_spill]] }
 0x2fb   : > { %p40_p1 = scmp.ge.s32.totalorder %s43_s15, 6   ;;  %s2018_s13 = sld [smem:[#allocation21_spill]] }
 0x2fc   : > { %s2019_s14 = sld [smem:[#allocation22_spill]]  ;;  %s2020_s3 = smov %s1453_s27 }
 0x2fd   : > { %s2021_s27 = smov %s1457_s28  ;;  %s2022_s28 = smov %s1684_s8 }
 0x2fe   : > { %s2023_s29 = smov %s1465_s30  ;;  %s2024_s30 = smov %s1469_s9 }
 0x2ff   : > { %s2025_s9 = smov %s1764_s21  ;;  %s2026_s10 = smov %s1477_s11 }
 0x300   : > { %s2027_s11 = smov %s1481_s12  ;;  %s2028_s12 = smov %s2017_s26 }
 0x301   :  { %42 = sbr.rel (!%p40_p1) target bundleno = 55 (0x37), region = 108 }
 0x308   :  { %836 = vsyncpa [#allocation8], 1 }
 0x309   :  { %838 = vsyncpa [#allocation8 + $0x1], 1 }
 0x30a   :  { %839 = vsyncpa [#allocation11], 1 }
 0x30b   :  { %841 = vsyncpa [#allocation11 + $0x1], 1 }
 0x30c   :  { %842 = vsyncpa [#allocation9], 1 }
 0x30d   :  { %844 = vsyncpa [#allocation9 + $0x1], 1 }

</bundles_post_ra>
